<compile_context>
chip_gen: v7x
topology: tpu7x:2x2x1
jax: 0.10.0
libtpu: 0.0.40
codegen_flags: <defaults>
</compile_context>

<pallas_src>
import jax
import jax.numpy as jnp
from jax import lax
from jax.experimental import pallas as pl
from jax.experimental.pallas import tpu as pltpu

H = 256                      # hidden width of the discriminator
_STREAM_BUDGET = 16 << 20    # VMEM budget for the pipelined input tiles


def _round_up(x, m):
    return ((x + m - 1) // m) * m


def _disc_kernel(yy_ref, wf_ref, bf_ref, w3_ref, b3_ref, w4_ref, b4_ref, o_ref):
    f32 = jnp.float32
    bf16 = jnp.bfloat16

    yy = yy_ref[...].astype(bf16)                              # (tb, 2F)

    # fused linear1 ‖ linear1_ -> linear2 (+ fused bias), ReLU — single K=2F dot
    h = jnp.dot(yy, wf_ref[...], preferred_element_type=f32) + bf_ref[...]
    h = jnp.maximum(h, 0.0)

    # linear3 + ReLU
    h = jnp.dot(h.astype(bf16), w3_ref[...], preferred_element_type=f32) + b3_ref[...]
    h = jnp.maximum(h, 0.0)

    # linear4 head: contract H between the (1,H) weight row and the (tb,H)
    # activations, producing the lane-dense (1, tb) output row directly
    # (no (tb,1) column -> no masked narrow stores / strided writeback DMA).
    row = lax.dot_general(w4_ref[...].astype(bf16), h.astype(bf16),
                          dimension_numbers=(((1,), (1,)), ((), ())),
                          preferred_element_type=f32)          # (1, tb)
    o_ref[...] = (row + b4_ref[0, 0]).astype(o_ref.dtype)


def part_global_discriminator(y, y_aux, fused, *, tile_b=1024, input_buffers=2):
    """Forward pass.

    y, y_aux : [B, F] float32 or bfloat16 (bf16 halves input HBM traffic).
    fused    : dict produced by fuse_params().
    tile_b   : batch rows per grid step (rounded to a multiple of 128 when tiled).
    input_buffers : pipeline depth for the input stream (use 3 only if a trace
                    shows exposed DMA at large tiles).
    """
    B, F = y.shape
    assert y_aux.shape == (B, F)
    two_f = 2 * F

    # Stage-1 K-concat: single [B, 2F] operand -> one K=2F dot in the kernel.
    # TODO(synk): have the upstream producer emit the concatenated (and ideally
    # bf16) features directly so this is not a separate HBM pass.
    yy = jnp.concatenate([y, y_aux], axis=1)

    # ---- batch tiling -------------------------------------------------------
    b8 = _round_up(B, 8)
    if b8 <= 256:
        tb = b8                                   # single tile (block == full array)
    else:
        # >=2 lane-aligned tiles so v7x's two TensorCores both get work.
        tb = max(128, (min(tile_b, b8 // 2) // 128) * 128)
        # Cap so the pipelined input tiles stay inside a conservative VMEM budget
        # (matters for large F; re-derived for the 64 MiB v7x generation).
        row_bytes = input_buffers * two_f * yy.dtype.itemsize
        tb = min(tb, max(128, (_STREAM_BUDGET // row_bytes) // 128 * 128))
    b_pad = _round_up(b8, tb)
    if b_pad != B:
        yy = jnp.pad(yy, ((0, b_pad - B), (0, 0)))
    grid = (b_pad // tb,)

    # ---- specs --------------------------------------------------------------
    if input_buffers == 2:
        yy_spec = pl.BlockSpec((tb, two_f), lambda i: (i, 0))
    else:   # optional deeper pipelining to hide DMA latency behind short compute
        yy_spec = pl.BlockSpec((tb, two_f), lambda i: (i, 0),
                               pipeline_mode=pl.Buffered(input_buffers))

    residents = (fused["w_fused"], fused["b_fused"], fused["w3"], fused["b3"],
                 fused["w4_row"])
    weight_bytes = sum(int(a.size) * a.dtype.itemsize for a in residents)
    # Weights/biases never change across the grid (constant index_map -> fetched
    # once).  Only request single-buffering when the extra default pipeline
    # buffer would cost meaningful VMEM (large feature_dim); at small F it is
    # noise and the default double-buffered resident block is used.
    single_buffer = weight_bytes > (2 << 20)

    def resident(arr):
        if single_buffer:
            return pl.BlockSpec(arr.shape, lambda i: (0, 0),
                                pipeline_mode=pl.Buffered(1))
        return pl.BlockSpec(arr.shape, lambda i: (0, 0))

    in_specs = [yy_spec] + [resident(a) for a in residents] + [
        pl.BlockSpec(memory_space=pltpu.MemorySpace.SMEM)]    # b4 scalar

    out_spec = pl.BlockSpec((1, tb), lambda i: (0, i))        # lane-dense rows

    # ---- compiler params / advisory cost ------------------------------------
    stream_bytes = (input_buffers * tb * two_f * yy.dtype.itemsize  # input tiles
                    + 2 * tb * 4)                                   # output tiles
    vmem_limit = int(min(max(weight_bytes + stream_bytes + (4 << 20), 16 << 20),
                         48 << 20))

    flops = 2 * b_pad * (two_f * H + H * H + H) + 4 * b_pad * H
    bytes_accessed = b_pad * two_f * yy.dtype.itemsize + b_pad * 4 + weight_bytes

    out = pl.pallas_call(
        _disc_kernel,
        out_shape=jax.ShapeDtypeStruct((1, b_pad), jnp.float32),
        grid=grid,
        in_specs=in_specs,
        out_specs=out_spec,
        compiler_params=pltpu.CompilerParams(
            dimension_semantics=("parallel",),
            vmem_limit_bytes=vmem_limit),
        cost_estimate=pl.CostEstimate(
            flops=flops, transcendentals=0, bytes_accessed=bytes_accessed),
    )(yy, *residents, fused["b4"])

    # block i wrote columns [i*tb, (i+1)*tb) of the (1, b_pad) row, i.e. the
    # original batch order -> just slice and restore the (B, 1) shape.
    return out[0, :B].reshape(B, 1)


def init_params(key, feature_dim):
    """torch.nn.Linear-style init; weights stored as [in, out]."""
    ks = jax.random.split(key, 10)

    def lin(kw, kb, fan_in, fan_out):
        bound = 1.0 / jnp.sqrt(jnp.float32(fan_in))
        w = jax.random.uniform(kw, (fan_in, fan_out), jnp.float32, -bound, bound)
        b = jax.random.uniform(kb, (1, fan_out), jnp.float32, -bound, bound)
        return w, b

    w1, b1 = lin(ks[0], ks[1], feature_dim, H)
    w1_, b1_ = lin(ks[2], ks[3], feature_dim, H)
    w2, b2 = lin(ks[4], ks[5], 2 * H, H)
    w3, b3 = lin(ks[6], ks[7], H, H)
    w4, b4 = lin(ks[8], ks[9], H, 1)
    return {"w1": w1, "b1": b1, "w1_": w1_, "b1_": b1_,
            "w2": w2, "b2": b2, "w3": w3, "b3": b3, "w4": w4, "b4": b4}


def fuse_params(p):
    """Host-side fusion: linear1 ‖ linear1_ -> linear2 folded into a single
    [2F, 256] weight (one K=2F stage-1 dot in the kernel) + bf16 weight casts."""
    w2a, w2b = p["w2"][:H], p["w2"][H:]
    w_fused = jnp.concatenate([p["w1"] @ w2a, p["w1_"] @ w2b], axis=0)   # [2F, 256]
    b_fused = p["b1"] @ w2a + p["b1_"] @ w2b + p["b2"]                   # [1, 256]
    return {
        "w_fused": w_fused.astype(jnp.bfloat16),
        "b_fused": b_fused,                      # f32
        "w3": p["w3"].astype(jnp.bfloat16),
        "b3": p["b3"],                           # f32
        "w4_row": p["w4"].T,                     # [1, 256] f32
        "b4": p["b4"].reshape(1, 1),             # scalar bias -> SMEM
    }


def _reference(y, y_aux, p):
    """Pure-JAX f32 reference matching the PyTorch forward."""
    h_y = y @ p["w1"] + p["b1"]
    h_aux = y_aux @ p["w1_"] + p["b1_"]
    h = jnp.concatenate([h_y, h_aux], axis=1)
    h = jnp.maximum(h @ p["w2"] + p["b2"], 0.0)
    h = jnp.maximum(h @ p["w3"] + p["b3"], 0.0)
    return h @ p["w4"] + p["b4"]


if __name__ == "__main__":
    key = jax.random.PRNGKey(0)

    def check(batch, feature_dim, k):
        k_y, k_aux, k_p = jax.random.split(k, 3)
        y = jax.random.normal(k_y, (batch, feature_dim), jnp.float32)
        y_aux = jax.random.normal(k_aux, (batch, feature_dim), jnp.float32)
        params = init_params(k_p, feature_dim)
        fused = fuse_params(params)
        out = jax.block_until_ready(part_global_discriminator(y, y_aux, fused))
        ref = _reference(y, y_aux, params)
        assert out.shape == (batch, 1), out.shape
        # bf16 matmul operands (f32 accumulation) -> relaxed tolerance vs f32 ref
        assert jnp.allclose(out, ref, atol=5e-2, rtol=5e-2), \
            float(jnp.max(jnp.abs(out - ref)))

    k1, k2 = jax.random.split(key)
    check(20, 32, k1)    # non-multiple-of-8 batch, single-tile path
    check(300, 48, k2)   # padded multi-tile grid + lane-dense tiled output path

    print("KERNEL_OK")
</pallas_src>

<mosaic_0001>
module attributes {stable_mosaic.version = 11 : i64} {
  func.func @_disc_kernel(%arg0: i32, %arg1: memref<24x64xf32, #tpu.memory_space<vmem>>, %arg2: memref<64x256xbf16, #tpu.memory_space<vmem>>, %arg3: memref<1x256xf32, #tpu.memory_space<vmem>>, %arg4: memref<256x256xbf16, #tpu.memory_space<vmem>>, %arg5: memref<1x256xf32, #tpu.memory_space<vmem>>, %arg6: memref<1x256xf32, #tpu.memory_space<vmem>>, %arg7: memref<1x1xf32, #tpu.memory_space<smem>>, %arg8: memref<1x24xf32, #tpu.memory_space<vmem>>) attributes {dimension_semantics = [#tpu.dimension_semantics<parallel>], iteration_bounds = array<i64: 1>, scalar_prefetch = 0 : i64, scratch_operands = 0 : i64, tpu.core_type = #tpu.core_type<tc>, window_params = [{transform_indices = @transform_0, window_bounds = array<i64: 24, 64>}, {pipeline_mode = #tpu.pipeline_mode<synchronous>, transform_indices = @transform_1, window_bounds = array<i64: 64, 256>}, {pipeline_mode = #tpu.pipeline_mode<synchronous>, transform_indices = @transform_2, window_bounds = array<i64: 1, 256>}, {pipeline_mode = #tpu.pipeline_mode<synchronous>, transform_indices = @transform_3, window_bounds = array<i64: 256, 256>}, {pipeline_mode = #tpu.pipeline_mode<synchronous>, transform_indices = @transform_4, window_bounds = array<i64: 1, 256>}, {pipeline_mode = #tpu.pipeline_mode<synchronous>, transform_indices = @transform_5, window_bounds = array<i64: 1, 256>}, {transform_indices = @transform_6, window_bounds = array<i64: 1, 1>}, {transform_indices = @transform_7, window_bounds = array<i64: 1, 24>}]} {
    %c0 = arith.constant 0 : index
    %c0_0 = arith.constant 0 : index
    %0 = vector.load %arg1[%c0, %c0_0] : memref<24x64xf32, #tpu.memory_space<vmem>>, vector<24x64xf32>
    %1 = arith.truncf %0 : vector<24x64xf32> to vector<24x64xbf16>
    %c0_1 = arith.constant 0 : index
    %c0_2 = arith.constant 0 : index
    %2 = vector.load %arg2[%c0_1, %c0_2] : memref<64x256xbf16, #tpu.memory_space<vmem>>, vector<64x256xbf16>
    %cst = arith.constant dense<0.000000e+00> : vector<24x256xf32>
    %3 = tpu.matmul %1, %2, %cst {dimension_numbers = #tpu.dot_dimension_numbers<[1], [0], [0], [1], [0, 0, 1, 1], [], []>} : vector<24x64xbf16>, vector<64x256xbf16>, vector<24x256xf32> -> vector<24x256xf32>
    %c0_3 = arith.constant 0 : index
    %c0_4 = arith.constant 0 : index
    %4 = vector.load %arg3[%c0_3, %c0_4] : memref<1x256xf32, #tpu.memory_space<vmem>>, vector<1x256xf32>
    %5 = vector.broadcast %4 : vector<1x256xf32> to vector<24x256xf32>
    %6 = arith.addf %3, %5 : vector<24x256xf32>
    %cst_5 = arith.constant 0.000000e+00 : f32
    %7 = vector.broadcast %cst_5 : f32 to vector<24x256xf32>
    %8 = arith.maximumf %6, %7 : vector<24x256xf32>
    %9 = arith.truncf %8 : vector<24x256xf32> to vector<24x256xbf16>
    %c0_6 = arith.constant 0 : index
    %c0_7 = arith.constant 0 : index
    %10 = vector.load %arg4[%c0_6, %c0_7] : memref<256x256xbf16, #tpu.memory_space<vmem>>, vector<256x256xbf16>
    %cst_8 = arith.constant dense<0.000000e+00> : vector<24x256xf32>
    %11 = tpu.matmul %9, %10, %cst_8 {dimension_numbers = #tpu.dot_dimension_numbers<[1], [0], [0], [1], [0, 0, 1, 1], [], []>} : vector<24x256xbf16>, vector<256x256xbf16>, vector<24x256xf32> -> vector<24x256xf32>
    %c0_9 = arith.constant 0 : index
    %c0_10 = arith.constant 0 : index
    %12 = vector.load %arg5[%c0_9, %c0_10] : memref<1x256xf32, #tpu.memory_space<vmem>>, vector<1x256xf32>
    %13 = vector.broadcast %12 : vector<1x256xf32> to vector<24x256xf32>
    %14 = arith.addf %11, %13 : vector<24x256xf32>
    %cst_11 = arith.constant 0.000000e+00 : f32
    %15 = vector.broadcast %cst_11 : f32 to vector<24x256xf32>
    %16 = arith.maximumf %14, %15 : vector<24x256xf32>
    %c0_12 = arith.constant 0 : index
    %c0_13 = arith.constant 0 : index
    %17 = vector.load %arg6[%c0_12, %c0_13] : memref<1x256xf32, #tpu.memory_space<vmem>>, vector<1x256xf32>
    %18 = arith.truncf %17 : vector<1x256xf32> to vector<1x256xbf16>
    %19 = arith.truncf %16 : vector<24x256xf32> to vector<24x256xbf16>
    %cst_14 = arith.constant dense<0.000000e+00> : vector<1x24xf32>
    %20 = tpu.matmul %18, %19, %cst_14 {dimension_numbers = #tpu.dot_dimension_numbers<[1], [1], [0], [0], [0, 0, 1, 0], [], []>} : vector<1x256xbf16>, vector<24x256xbf16>, vector<1x24xf32> -> vector<1x24xf32>
    %c0_15 = arith.constant 0 : index
    %c0_16 = arith.constant 0 : index
    %21 = memref.load %arg7[%c0_15, %c0_16] : memref<1x1xf32, #tpu.memory_space<smem>>
    %22 = vector.broadcast %21 : f32 to vector<1x24xf32>
    %23 = arith.addf %20, %22 : vector<1x24xf32>
    %c0_17 = arith.constant 0 : index
    %c0_18 = arith.constant 0 : index
    %24 = vector.load %arg8[%c0_17, %c0_18] : memref<1x24xf32, #tpu.memory_space<vmem>>, vector<1x24xf32>
    tpu.vector_store %arg8[%c0_17, %c0_18], %23 {strides = array<i32>} : memref<1x24xf32, #tpu.memory_space<vmem>>, vector<1x24xf32>,
    return
  }
  func.func @transform_0(%arg0: i32) -> (i32, i32) {
    %c0_i32 = arith.constant 0 : i32
    %c0_i32_0 = arith.constant 0 : i32
    return %arg0, %c0_i32 : i32, i32
  }
  func.func @transform_1(%arg0: i32) -> (i32, i32) {
    %c0_i32 = arith.constant 0 : i32
    %c0_i32_0 = arith.constant 0 : i32
    %c0_i32_1 = arith.constant 0 : i32
    return %c0_i32, %c0_i32_0 : i32, i32
  }
  func.func @transform_2(%arg0: i32) -> (i32, i32) {
    %c0_i32 = arith.constant 0 : i32
    %c0_i32_0 = arith.constant 0 : i32
    %c0_i32_1 = arith.constant 0 : i32
    return %c0_i32, %c0_i32_0 : i32, i32
  }
  func.func @transform_3(%arg0: i32) -> (i32, i32) {
    %c0_i32 = arith.constant 0 : i32
    %c0_i32_0 = arith.constant 0 : i32
    %c0_i32_1 = arith.constant 0 : i32
    return %c0_i32, %c0_i32_0 : i32, i32
  }
  func.func @transform_4(%arg0: i32) -> (i32, i32) {
    %c0_i32 = arith.constant 0 : i32
    %c0_i32_0 = arith.constant 0 : i32
    %c0_i32_1 = arith.constant 0 : i32
    return %c0_i32, %c0_i32_0 : i32, i32
  }
  func.func @transform_5(%arg0: i32) -> (i32, i32) {
    %c0_i32 = arith.constant 0 : i32
    %c0_i32_0 = arith.constant 0 : i32
    %c0_i32_1 = arith.constant 0 : i32
    return %c0_i32, %c0_i32_0 : i32, i32
  }
  func.func @transform_6(%arg0: i32) -> (i32, i32) {
    %c0_i32 = arith.constant 0 : i32
    %c0_i32_0 = arith.constant 0 : i32
    %c0_i32_1 = arith.constant 0 : i32
    return %c0_i32, %c0_i32_0 : i32, i32
  }
  func.func @transform_7(%arg0: i32) -> (i32, i32) {
    %c0_i32 = arith.constant 0 : i32
    %c0_i32_0 = arith.constant 0 : i32
    return %c0_i32, %arg0 : i32, i32
  }
}

</mosaic_0001>

<bundles_post_ra>
// kernel: tpu_custom_call.1
= control target key start
LH: loop header
LB: loop body
LE: loop exit
PB: predicated region body
PF: predicated region fallthrough
CT: control target
= control target key end

     0   :  { %13 = vsyncpa [#allocation4], 0  ;;  %s873_s0 = inlined_call_operand.hbm [shape: f32[24,64], index: 0, kind: input, shape index: {}]   ;;  %s874_s1 = inlined_call_operand.hbm [shape: bf16[64,256], index: 1, kind: input, shape index: {}]   ;;  %s875_s2 = inlined_call_operand.vmem [shape: f32[1,256], index: 2, kind: input, shape index: {}]   ;;  %s876_s3 = inlined_call_operand.hbm [shape: bf16[256,256], index: 3, kind: input, shape index: {}]   ;;  %s877_s4 = inlined_call_operand.vmem [shape: f32[1,256], index: 4, kind: input, shape index: {}]   ;;  %s878_s5 = inlined_call_operand.vmem [shape: f32[1,256], index: 5, kind: input, shape index: {}]   ;;  %s879_s6 = inlined_call_operand.<no memory space> [shape: f32[1,1], index: 6, kind: input, shape index: {}]   ;;  %s880_s7 = inlined_call_operand.hbm [shape: f32[1,24], index: 7, kind: output, shape index: {}]  }
   0x1   :  { %14 = vsyncpa [#allocation7], 0 }
   0x2   :  { %15 = vsyncpa [#allocation5], 0  ;;  %s745_s24 = smov [#allocation6]   ;;  %s746_s26 = smov [#allocation3]  }
   0x3   :  { %s33_s25 = sshll.u32 %s745_s24, 4  ;;  %s21_s27 = sshll.u32 %s746_s26, 4  ;;  %s34_s25 = int_to_ptr.vmem [resolvable:$true] %s33_s25  ;;  %s792_s27 = int_to_ptr.vmem [resolvable:$true] %s21_s27 }
   0x4   :  { %s651_s30 = scalar_lea.hbm %s874_s1, 1024 }
   0x5   :  { %p652_p0 = scmp.ne.s32.totalorder %s874_s1, %s651_s30  ;;  %p655_p1 = scmp.lt.u32.totalorder %s651_s30, %s874_s1 }
   0x7   :  { %p657_p2 = pnand %p655_p1, %p652_p0 }
   0x9   :  { %660 = shalt.err (!%p657_p2)
}
   0xa   :  { %s661_s12 = scalar_lea.vmem %s34_s25, 1024  ;;  %p666_p4 = scmp.lt.s32.totalorder %s34_s25, %s34_s25 }
   0xb   :  { %p662_p3 = scmp.ne.s32.totalorder %s34_s25, %s661_s12  ;;  %p667_p5 = scmp.lt.s32.totalorder %s661_s12, %s661_s12 }
   0xd   :  { %p668_p6 = por %p667_p5, %p666_p4 }
   0xf   :  { %p669_p7 = pnand %p668_p6, %p662_p3 }
  0x11   :  { %672 = shalt.err (!%p669_p7)
}
  0x12   :  { %s747_s13 = smov 128   ;;  %s748_s14 = smov 8  }
  0x13   :  { %39 = dma.hbm_to_vmem [thread:$0]  %s874_s1, 1024, %s34_s25, [#allocation7], %s747_s13, %s747_s13, %s748_s14  }
  0x14   :  { %s673_s19 = scalar_lea.hbm %s873_s0, 384 }
  0x15   :  { %p674_p8 = scmp.ne.s32.totalorder %s873_s0, %s673_s19  ;;  %p677_p9 = scmp.lt.u32.totalorder %s673_s19, %s873_s0 }
  0x17   :  { %p679_p10 = pnand %p677_p9, %p674_p8 }
  0x19   :  { %682 = shalt.err (!%p679_p10)
}
  0x1a   :  { %s683_s24 = scalar_lea.vmem %s792_s27, 384  ;;  %p688_p12 = scmp.lt.s32.totalorder %s792_s27, %s792_s27 }
  0x1b   :  { %p684_p11 = scmp.ne.s32.totalorder %s792_s27, %s683_s24  ;;  %p689_p13 = scmp.lt.s32.totalorder %s683_s24, %s683_s24 }
  0x1d   :  { %p690_p0 = por %p689_p13, %p688_p12 }
  0x1f   :  { %p691_p1 = pnand %p690_p0, %p684_p11 }
  0x21   :  { %694 = shalt.err (!%p691_p1)
}
  0x22   :  { %27 = dma.hbm_to_vmem [thread:$0]  %s873_s0, 384, %s792_s27, [#allocation4], %s747_s13, %s747_s13, %s748_s14  }
  0x23   :  { %s749_s26 = smov [#allocation8]   ;;  %s695_s8 = scalar_lea.hbm %s876_s3, 4096 }
  0x24   :  { %s47_s28 = sshll.u32 %s749_s26, 4  ;;  %p696_p2 = scmp.ne.s32.totalorder %s876_s3, %s695_s8  ;;  %s48_s28 = int_to_ptr.vmem [resolvable:$true] %s47_s28 }
  0x25   :  { %p699_p3 = scmp.lt.u32.totalorder %s695_s8, %s876_s3 }
  0x27   :  { %p701_p4 = pnand %p699_p3, %p696_p2 }
  0x29   :  { %704 = shalt.err (!%p701_p4)
}
  0x2a   :  { %s705_s15 = scalar_lea.vmem %s48_s28, 4096  ;;  %p710_p6 = scmp.lt.s32.totalorder %s48_s28, %s48_s28 }
  0x2b   :  { %p706_p5 = scmp.ne.s32.totalorder %s48_s28, %s705_s15  ;;  %p711_p7 = scmp.lt.s32.totalorder %s705_s15, %s705_s15 }
  0x2d   :  { %p712_p8 = por %p711_p7, %p710_p6 }
  0x2f   :  { %p713_p9 = pnand %p712_p8, %p706_p5 }
  0x31   :  { %716 = shalt.err (!%p713_p9)
}
  0x32   :  { %53 = dma.hbm_to_vmem [thread:$0]  %s876_s3, 4096, %s48_s28, [#allocation7], %s747_s13, %s747_s13, %s748_s14  }
  0x33   :  { %739 = dma.done.wait [#allocation4], 384  }
  0x34   :  { %740 = vsyncadd [#allocation4], 4294966912 }
  0x35   :  { %741 = dma.done.wait [#allocation7], 5120  }
  0x36   :  { %742 = vsyncadd [#allocation7], 4294962176  ;;  %v750_v0 = vmov 0   ;;  %v591_v1 = vld [vmem:[#allocation6 + $0x4] ss:$8 sps:$4 sm:$0xff]   ;;  %v71_v14 = vld [vmem:[#allocation3 + $0x8] sm:$0xff]  ;;  %v85_v46 = vlaneseq }
  0x37   :  { %174 = vmatprep.mubr.bf16.mxu0 %v750_v0  ;;  %v593_v2 = vld [vmem:[#allocation6] ss:$8 sps:$4 sm:$0xff]   ;;  %142 = vmatprep.subr.bf16.mxu0 %v591_v1  ;;  %v594_v3 = vld [vmem:[#allocation6 + $0x14] ss:$8 sps:$4 sm:$0xff]   ;;  %v596_v4 = vld [vmem:[#allocation6 + $0x10] ss:$8 sps:$4 sm:$0xff]  }
  0x38   :  { %143 = vmatpush1.bf16.msra.mxu0 %v593_v2  ;;  %v597_v5 = vld [vmem:[#allocation6 + $0x24] ss:$8 sps:$4 sm:$0xff]   ;;  %v599_v6 = vld [vmem:[#allocation6 + $0x20] ss:$8 sps:$4 sm:$0xff]   ;;  %v600_v9 = vld [vmem:[#allocation6 + $0x34] ss:$8 sps:$4 sm:$0xff]  }
  0x39   :  { %144 = vmatprep.subr.bf16.mxu0 %v594_v3  ;;  %v603_v7 = vld [vmem:[#allocation8 + $0x4] ss:$8 sps:$4 sm:$0xff]   ;;  %v605_v8 = vld [vmem:[#allocation8] ss:$8 sps:$4 sm:$0xff]   ;;  %v606_v10 = vld [vmem:[#allocation8 + $0x14] ss:$8 sps:$4 sm:$0xff]  }
  0x3a   :  { %v602_v11 = vld [vmem:[#allocation6 + $0x30] ss:$8 sps:$4 sm:$0xff]   ;;  %v70_v12 = vld [vmem:[#allocation3] sm:$0xff]  ;;  %407 = vmatprep.subr.bf16.mxu1 %v603_v7  ;;  %vm135_vm0 = vcmask 523264   ;;  %v612_v18 = vld [vmem:[#allocation8 + $0x34] ss:$8 sps:$4 sm:$0xff]  }
  0x3b   :  { %408 = vmatpush1.bf16.msra.mxu1 %v605_v8  ;;  %v608_v13 = vld [vmem:[#allocation8 + $0x10] ss:$8 sps:$4 sm:$0xff]   ;;  %v609_v15 = vld [vmem:[#allocation8 + $0x24] ss:$8 sps:$4 sm:$0xff]   ;;  %v73_v16 = vpack.c.bf16 %v71_v14, %v70_v12  ;;  %v611_v17 = vld [vmem:[#allocation8 + $0x20] ss:$8 sps:$4 sm:$0xff]  }
  0x3c   :  { %145 = vmatpush1.bf16.msra.mxu0 %v596_v4  ;;  %409 = vmatprep.subr.bf16.mxu1 %v606_v10  ;;  %v614_v19 = vld [vmem:[#allocation8 + $0x30] ss:$8 sps:$4 sm:$0xff]   ;;  %v615_v21 = vld [vmem:[#allocation8 + $0x44] ss:$8 sps:$4 sm:$0xff]   ;;  %v617_v23 = vld [vmem:[#allocation8 + $0x40] ss:$8 sps:$4 sm:$0xff]  }
  0x3d   :  { %146 = vmatprep.subr.bf16.mxu0 %v597_v5  ;;  %v72_v20 = vld [vmem:[#allocation3 + $0x10] sm:$0xff]  ;;  %v621_v26 = vld [vmem:[#allocation8 + $0x64] ss:$8 sps:$4 sm:$0xff]   ;;  %v623_v27 = vld [vmem:[#allocation8 + $0x60] ss:$8 sps:$4 sm:$0xff]   ;;  %v86_v47 = vshrl.u32 %v85_v46, 7 }
  0x3e   :  { %v74_v22 = vpack.c.bf16 %v72_v20, %v72_v20  ;;  %v618_v24 = vld [vmem:[#allocation8 + $0x54] ss:$8 sps:$4 sm:$0xff]   ;;  %v620_v25 = vld [vmem:[#allocation8 + $0x50] ss:$8 sps:$4 sm:$0xff]   ;;  %v627_v30 = vld [vmem:[#allocation8 + $0x84] ss:$8 sps:$4 sm:$0xff]  }
  0x3f   :  { %410 = vmatpush1.bf16.msra.mxu1 %v608_v13  ;;  %v624_v28 = vld [vmem:[#allocation8 + $0x74] ss:$8 sps:$4 sm:$0xff]   ;;  %v626_v29 = vld [vmem:[#allocation8 + $0x70] ss:$8 sps:$4 sm:$0xff]   ;;  %v629_v31 = vld [vmem:[#allocation8 + $0x80] ss:$8 sps:$4 sm:$0xff]  }
  0x40   :  { %147 = vmatpush1.bf16.msra.mxu0 %v599_v6  ;;  %411 = vmatprep.subr.bf16.mxu1 %v609_v15  ;;  %v630_v32 = vld [vmem:[#allocation8 + $0x94] ss:$8 sps:$4 sm:$0xff]   ;;  %v632_v33 = vld [vmem:[#allocation8 + $0x90] ss:$8 sps:$4 sm:$0xff]   ;;  %v633_v34 = vld [vmem:[#allocation8 + $0xa4] ss:$8 sps:$4 sm:$0xff]  }
  0x41   :  { %148 = vmatprep.subr.bf16.mxu0 %v600_v9  ;;  %v635_v35 = vld [vmem:[#allocation8 + $0xa0] ss:$8 sps:$4 sm:$0xff]   ;;  %v636_v36 = vld [vmem:[#allocation8 + $0xb4] ss:$8 sps:$4 sm:$0xff]   ;;  %v638_v37 = vld [vmem:[#allocation8 + $0xb0] ss:$8 sps:$4 sm:$0xff]  }
  0x42   :  { %v639_v38 = vld [vmem:[#allocation8 + $0xc4] ss:$8 sps:$4 sm:$0xff]   ;;  %v641_v39 = vld [vmem:[#allocation8 + $0xc0] ss:$8 sps:$4 sm:$0xff]   ;;  %v642_v40 = vld [vmem:[#allocation8 + $0xd4] ss:$8 sps:$4 sm:$0xff]  }
  0x43   :  { %412 = vmatpush1.bf16.msra.mxu1 %v611_v17  ;;  %v644_v41 = vld [vmem:[#allocation8 + $0xd0] ss:$8 sps:$4 sm:$0xff]   ;;  %v645_v42 = vld [vmem:[#allocation8 + $0xe4] ss:$8 sps:$4 sm:$0xff]   ;;  %v647_v43 = vld [vmem:[#allocation8 + $0xe0] ss:$8 sps:$4 sm:$0xff]  }
  0x44   :  { %149 = vmatpush1.bf16.msra.mxu0 %v602_v11  ;;  %413 = vmatprep.subr.bf16.mxu1 %v612_v18  ;;  %v648_v44 = vld [vmem:[#allocation8 + $0xf4] ss:$8 sps:$4 sm:$0xff]   ;;  %v650_v45 = vld [vmem:[#allocation8 + $0xf0] ss:$8 sps:$4 sm:$0xff]   ;;  %v844_v48 = vsub.s32 0, %v86_v47  ;;  %v91_v50 = vsub.s32 1, %v86_v47 }
  0x45   :  { %v83_v49 = vld [vmem:[%s875_s2] sm:$0x3]  ;;  %s751_s18 = smov [#allocation9]   ;;  %vm524_vm1 = vcmask 188416  }
  0x46   :  { %v88_v51 = vrot.slane %v83_v49, %v844_v48  ;;  %v92_v52 = vrot.slane %v83_v49, %v91_v50  ;;  %v464_v13 = vld [vmem:[%s878_s5] sm:$0x3]  ;;  %s532_s19 = sshll.u32 %s751_s18, 4  ;;  %s533_s19 = int_to_ptr.vmem [resolvable:$true] %s532_s19 }
  0x47   :  { %550 = vmatmul.mubr.msk.bf16.vlgmr.msra.gmra.mrb[0].mxu0 %vm135_vm0, %v73_v16  ;;  %414 = vmatpush1.bf16.msra.mxu1 %v614_v19  ;;  %v473_v14 = vrot.slane %v464_v13, %v91_v50  ;;  %v235_v16 = vld [vmem:[%s877_s4] sm:$0x3]  ;;  %s717_s20 = scalar_lea.vmem %s533_s19, 16  ;;  %s721_s21 = scalar_lea.vmem %s533_s19, 32 }
  0x48   :  { %184 = vmatprep.mubr.bf16.mxu0 %v750_v0  ;;  %415 = vmatprep.subr.bf16.mxu1 %v615_v21  ;;  %v240_v17 = vrot.slane %v235_v16, %v844_v48  ;;  %v244_v18 = vrot.slane %v235_v16, %v91_v50  ;;  %p718_p10 = scmp.ne.s32.totalorder %s533_s19, %s717_s20  ;;  %p722_p11 = scmp.lt.s32.totalorder %s533_s19, %s533_s19 }
  0x49   :  { %v477_v15 = vpack.c.bf16 %v473_v14, %v473_v14  ;;  %p723_p12 = scmp.lt.s32.totalorder %s721_s21, %s717_s20 }
  0x4b   :  { %416 = vmatpush1.bf16.msra.mxu1 %v617_v23  ;;  %p724_p13 = por %p723_p12, %p722_p11 }
  0x4c   :  { %417 = vmatprep.subr.bf16.mxu1 %v618_v24 }
  0x4d   :  { %p725_p0 = pnand %p724_p13, %p718_p10 }
  0x4f   :  { %551 = vmatmul.mubr.msk.bf16.gmra.mrb[4].mxu0 %vm135_vm0, %v74_v22  ;;  %418 = vmatpush1.bf16.msra.mxu1 %v620_v25 }
  0x50   :  { %419 = vmatprep.subr.bf16.mxu1 %v621_v26  ;;  %516 = vmatprep.mubr.bf16.mxu0 %v477_v15 }
  0x53   :  { %420 = vmatpush1.bf16.msra.mxu1 %v623_v27 }
  0x54   :  { %421 = vmatprep.subr.bf16.mxu1 %v624_v28 }
  0x57   :  { %422 = vmatpush1.bf16.msra.mxu1 %v626_v29 }
  0x58   :  { %423 = vmatprep.subr.bf16.mxu1 %v627_v30 }
  0x5b   :  { %424 = vmatpush1.bf16.msra.mxu1 %v629_v31 }
  0x5c   :  { %425 = vmatprep.subr.bf16.mxu1 %v630_v32 }
  0x5f   :  { %426 = vmatpush1.bf16.msra.mxu1 %v632_v33 }
  0x60   :  { %427 = vmatprep.subr.bf16.mxu1 %v633_v34 }
  0x63   :  { %428 = vmatpush1.bf16.msra.mxu1 %v635_v35 }
  0x64   :  { %429 = vmatprep.subr.bf16.mxu1 %v636_v36 }
  0x67   :  { %430 = vmatpush1.bf16.msra.mxu1 %v638_v37 }
  0x68   :  { %431 = vmatprep.subr.bf16.mxu1 %v639_v38 }
  0x6b   :  { %432 = vmatpush1.bf16.msra.mxu1 %v641_v39 }
  0x6c   :  { %433 = vmatprep.subr.bf16.mxu1 %v642_v40 }
  0x6f   :  { %434 = vmatpush1.bf16.msra.mxu1 %v644_v41 }
  0x70   :  { %435 = vmatprep.subr.bf16.mxu1 %v645_v42 }
  0x73   :  { %436 = vmatpush1.bf16.msra.mxu1 %v647_v43  ;;  %v469_v43 = vrot.slane %v464_v13, %v844_v48 }
  0x74   :  { %437 = vmatprep.subr.bf16.mxu1 %v648_v44 }
  0x75   :  { %v476_v44 = vpack.c.bf16 %v469_v43, %v469_v43 }
  0x77   :  { %438 = vmatpush1.bf16.msra.mxu1 %v650_v45  ;;  %v483_v45 = vstv %s879_s6 }
 0x11a   :  { %v176_v53 = vpop.f32.mrb[0].mxu0 }
 0x11b   :  { %v177_v54 = vadd.f32 %v176_v53, %v88_v51  ;;  %v178_v55 = vpop.f32.mrb[1].mxu0 }
 0x11c   :  { %v179_v56 = vadd.f32 %v178_v55, %v92_v52  ;;  %v180_v57 = vpop.f32.mrb[2].mxu0 }
 0x11d   :  { %v181_v58 = vadd.f32 %v180_v57, %v88_v51  ;;  %v182_v59 = vpop.f32.mrb[3].mxu0  ;;  %v193_v61 = vmax.f32 %v177_v54, 0.0 }
 0x11e   :  { %v183_v60 = vadd.f32 %v182_v59, %v92_v52  ;;  %v194_v63 = vmax.f32 %v179_v56, 0.0 }
 0x11f   :  { %v195_v62 = vmax.f32 %v181_v58, 0.0 }
 0x120   :  { %v196_v0 = vmax.f32 %v183_v60, 0.0 }
 0x121   :  { %v199_v1 = vpack.c.bf16 %v195_v62, %v193_v61 }
 0x122   :  { %v186_v2 = vpop.f32.mrb[4].mxu0  ;;  %v200_v3 = vpack.c.bf16 %v196_v0, %v194_v63 }
 0x123   :  { %v187_v4 = vadd.f32 %v186_v2, %v88_v51  ;;  %v188_v5 = vpop.f32.mrb[5].mxu0 }
 0x124   :  { %v189_v6 = vadd.f32 %v188_v5, %v92_v52  ;;  %439 = vmatprep.mubr.bf16.mxu1 %v200_v3  ;;  %v190_v7 = vpop.f32.mrb[6].mxu0 }
 0x125   :  { %v197_v8 = vmax.f32 %v187_v4, 0.0  ;;  %440 = vmatmul.mubr.bf16.vlgmr.msra.gmra.mrb[0].mxu1 %v199_v1  ;;  %v191_v9 = vpop.f32.mrb[7].mxu0 }
 0x126   :  { %v198_v10 = vmax.f32 %v189_v6, 0.0 }
 0x127   :  { %v201_v12 = vpack.c.bf16 %v197_v8, %v197_v8 }
 0x128   :  { %v202_v11 = vpack.c.bf16 %v198_v10, %v198_v10 }
 0x12a   :  { %449 = vmatprep.mubr.bf16.mxu1 %v202_v11 }
 0x12d   :  { %450 = vmatmul.mubr.bf16.gmra.mrb[4].mxu1 %v201_v12 }
 0x1f8   :  { %v441_v19 = vpop.f32.mrb[0].mxu1 }
 0x1f9   :  { %v442_v20 = vadd.f32 %v441_v19, %v240_v17  ;;  %v443_v21 = vpop.f32.mrb[1].mxu1 }
 0x1fa   :  { %v444_v22 = vadd.f32 %v443_v21, %v244_v18  ;;  %v445_v23 = vpop.f32.mrb[2].mxu1 }
 0x1fb   :  { %v446_v24 = vadd.f32 %v445_v23, %v240_v17  ;;  %v447_v25 = vpop.f32.mrb[3].mxu1  ;;  %v458_v27 = vmax.f32 %v442_v20, 0.0 }
 0x1fc   :  { %v448_v26 = vadd.f32 %v447_v25, %v244_v18  ;;  %v459_v29 = vmax.f32 %v444_v22, 0.0 }
 0x1fd   :  { %v460_v28 = vmax.f32 %v446_v24, 0.0 }
 0x1fe   :  { %v461_v30 = vmax.f32 %v448_v26, 0.0 }
 0x1ff   :  { %v478_v31 = vpack.c.bf16 %v460_v28, %v458_v27 }
 0x200   :  { %v479_v32 = vpack.c.bf16 %v461_v30, %v459_v29  ;;  %v451_v33 = vpop.f32.mrb[4].mxu1 }
 0x201   :  { %v452_v34 = vadd.f32 %v451_v33, %v240_v17  ;;  %v453_v35 = vpop.f32.mrb[5].mxu1 }
 0x202   :  { %v454_v36 = vadd.f32 %v453_v35, %v244_v18  ;;  %v455_v37 = vpop.f32.mrb[6].mxu1  ;;  %484 = vmatprep.subr.bf16.mxu0 %v479_v32 }
 0x203   :  { %v456_v38 = vpop.f32.mrb[7].mxu1  ;;  %485 = vmatpush1.bf16.xpose.msra.mxu0 %v478_v31  ;;  %v462_v40 = vmax.f32 %v452_v34, 0.0 }
 0x204   :  { %v463_v39 = vmax.f32 %v454_v36, 0.0 }
 0x205   :  { %v480_v42 = vpack.c.bf16 %v462_v40, %v462_v40 }
 0x206   :  { %v481_v41 = vpack.c.bf16 %v463_v39, %v463_v39 }
 0x208   :  { %486 = vmatprep.subr.bf16.mxu0 %v481_v41 }
 0x20b   :  { %487 = vmatpush1.bf16.xpose.msra.mxu0 %v480_v42 }
 0x212   :  { %517 = vmatmul.mubr.bf16.vlgmr.msra.gmra.mrb[8].mxu0 %v476_v44 }
 0x2e5   :  { %v518_v46 = vpop.f32.mrb[8].mxu0 }
 0x2e6   :  { %v519_v47 = vadd.f32 %v518_v46, %v483_v45  ;;  %v520_v49 = vpop.f32.mrb[9].mxu0 }
 0x2e7   :  { %v521_v50 = vpop.f32.mrb[10].mxu0 }
 0x2e8   :  { %v522_v51 = vpop.f32.mrb[11].mxu0  ;;  %525 = vst.msk [vmem:[#allocation9] sm:$0x1] %vm524_vm1, %v519_v47 }
 0x2e9   :  { %728 = shalt.err (!%p725_p0)
}
 0x2ea   :  { %s729_s23 = scalar_lea.hbm %s880_s7, 16 }
 0x2eb   :  { %p730_p1 = scmp.ne.s32.totalorder %s880_s7, %s729_s23  ;;  %p733_p2 = scmp.lt.u32.totalorder %s729_s23, %s880_s7 }
 0x2ed   :  { %p735_p3 = pnand %p733_p2, %p730_p1 }
 0x2ef   :  { %738 = shalt.err (!%p735_p3)
}
 0x2f0   :  { %535 = dma.vmem_to_hbm [thread:$0]  %s533_s19, 16, %s880_s7, [#allocation5]  }
 0x2f1   :  { %743 = dma.done.wait [#allocation5], 16  }
 0x2f2   :  { %744 = vsyncadd [#allocation5], 4294967280 }
 0x2f3   :  { %539 = vsyncpa [#allocation4], 1 }
 0x2f4   :  { %540 = vsyncpa [#allocation7], 1 }
 0x2f5   :  { %541 = vsyncpa [#allocation5], 1 }

</bundles_post_ra>
